<compile_context>
chip_gen: v7x
topology: tpu7x:2x2x1
jax: 0.10.0
libtpu: 0.0.40
codegen_flags: <defaults>
</compile_context>

<pallas_src>
import functools

import jax
import jax.numpy as jnp
from jax.experimental import pallas as pl
from jax.experimental.pallas import tpu as pltpu


def value_head_kernel(x_ref, w_ref, b_ref, o_ref, *, use_tanh, scalar_bias):
    # x_ref: (TM, H) VMEM   w_ref: (H, C) VMEM (resident)
    # b_ref: (C,) SMEM scalar when C == 1, else (1, C) VMEM (resident)
    # o_ref: (TM, C) VMEM
    y = jnp.dot(x_ref[...], w_ref[...], preferred_element_type=jnp.float32)
    if scalar_bias:
        y = y + b_ref[0]          # SMEM scalar bias (C == 1)
    else:
        y = y + b_ref[...]        # (1, C) VMEM bias tile, broadcast over rows
    if use_tanh:
        y = jnp.tanh(y)
    o_ref[...] = y.astype(o_ref.dtype)


def _round_down(x, m):
    return max((x // m) * m, m)


def value_head(hidden_states, weight, bias, *, use_tanh=False, tm=None):
    """hidden_states: [B, S, H]; weight: [H, C]; bias: [C] -> [B, S, C]."""
    B, S, H = hidden_states.shape
    C = weight.shape[1]
    M = B * S

    x2d = hidden_states.reshape(M, H)

    x_itemsize = jnp.dtype(hidden_states.dtype).itemsize
    w_itemsize = jnp.dtype(weight.dtype).itemsize
    # Sublane multiple for the x / out blocks: 8 (f32), 16 (bf16), 32 (int8/fp8).
    sublane = max(8, 32 // x_itemsize)

    if tm is None:
        # Target ~4 MiB per x tile; double-buffered -> ~8 MiB of VMEM for x,
        # leaving headroom for the resident weight and output buffers on
        # v7x (64 MiB phys / 32 MiB default scoped) and v5e (16 MiB default scoped).
        budget = 4 * 1024 * 1024
        tm = max(budget // max(H * x_itemsize, 1), sublane)
    if tm >= M:
        tm = M                       # single full-extent tile (always layout-legal)
    else:
        tm = _round_down(tm, sublane)  # keep (8,128)-rule-compliant blocks

    grid = (pl.cdiv(M, tm),)

    in_specs = [
        pl.BlockSpec((tm, H), lambda i: (i, 0)),   # streamed x tiles
        pl.BlockSpec((H, C), lambda i: (0, 0)),    # weight stays resident
    ]
    if C == 1:
        in_specs.append(pl.BlockSpec(memory_space=pltpu.MemorySpace.SMEM))
        bias_arg = bias.reshape(C)
    else:
        in_specs.append(pl.BlockSpec((1, C), lambda i: (0, 0)))
        bias_arg = bias.reshape(1, C)

    cost = pl.CostEstimate(
        flops=2 * M * H * C,
        transcendentals=M * C if use_tanh else 0,
        bytes_accessed=(M * H * x_itemsize
                        + H * C * w_itemsize
                        + M * C * x_itemsize
                        + C * jnp.dtype(bias.dtype).itemsize),
    )

    out = pl.pallas_call(
        functools.partial(value_head_kernel, use_tanh=use_tanh,
                          scalar_bias=(C == 1)),
        out_shape=jax.ShapeDtypeStruct((M, C), hidden_states.dtype),
        grid=grid,
        in_specs=in_specs,
        out_specs=pl.BlockSpec((tm, C), lambda i: (i, 0)),
        compiler_params=pltpu.CompilerParams(
            dimension_semantics=("parallel",)),   # shards rows across v7x's 2 TCs
        cost_estimate=cost,
    )(x2d, weight, bias_arg)

    return out.reshape(B, S, C)


if __name__ == "__main__":
    key = jax.random.PRNGKey(0)
    kx, kw, kb = jax.random.split(key, 3)

    # Small shapes consistent with the module's forward: [B, S, H] -> [B, S, 1].
    B, S, H = 2, 8, 32
    num_labels = 1

    hidden_states = jax.random.normal(kx, (B, S, H), dtype=jnp.float32)
    # Deterministic nn.Linear-style init (synthetic, no checkpoint load).
    weight = jax.random.normal(kw, (H, num_labels), dtype=jnp.float32) * (1.0 / jnp.sqrt(H))
    bias = jax.random.normal(kb, (num_labels,), dtype=jnp.float32) * 0.01

    out = jax.block_until_ready(value_head(hidden_states, weight, bias, use_tanh=False))
    ref = (hidden_states.reshape(B * S, H) @ weight + bias).reshape(B, S, num_labels)
    assert out.shape == (B, S, num_labels)
    assert jnp.allclose(out, ref, atol=1e-5, rtol=1e-5)

    # Exercise the M-tiled path: grid > 1, a partial last tile, and tanh activation.
    B2, S2, H2 = 3, 40, 128      # M = 120 -> 16-row tiles, last tile partial (8 rows)
    x2 = jax.random.normal(kx, (B2, S2, H2), dtype=jnp.float32)
    w2 = jax.random.normal(kw, (H2, num_labels), dtype=jnp.float32) * (1.0 / jnp.sqrt(H2))
    b2 = jax.random.normal(kb, (num_labels,), dtype=jnp.float32) * 0.01
    out2 = jax.block_until_ready(value_head(x2, w2, b2, use_tanh=True, tm=16))
    ref2 = jnp.tanh(x2.reshape(B2 * S2, H2) @ w2 + b2).reshape(B2, S2, num_labels)
    assert jnp.allclose(out2, ref2, atol=1e-5, rtol=1e-5)

    # TODO(synk): dropout layers are Identity here (eval semantics); training-mode
    # dropout would need pltpu.prng_* in-kernel and is intentionally not faked.
    print("KERNEL_OK")
</pallas_src>

<mosaic_0001>
module attributes {stable_mosaic.version = 11 : i64} {
  func.func @value_head_kernel(%arg0: i32, %arg1: memref<16x32xf32, #tpu.memory_space<vmem>>, %arg2: memref<32x1xf32, #tpu.memory_space<vmem>>, %arg3: memref<1xf32, #tpu.memory_space<smem>>, %arg4: memref<16x1xf32, #tpu.memory_space<vmem>>) attributes {dimension_semantics = [#tpu.dimension_semantics<parallel>], iteration_bounds = array<i64: 1>, scalar_prefetch = 0 : i64, scratch_operands = 0 : i64, tpu.core_type = #tpu.core_type<tc>, window_params = [{transform_indices = @transform_0, window_bounds = array<i64: 16, 32>}, {pipeline_mode = #tpu.pipeline_mode<synchronous>, transform_indices = @transform_1, window_bounds = array<i64: 32, 1>}, {transform_indices = @transform_2, window_bounds = array<i64: 1>}, {transform_indices = @transform_3, window_bounds = array<i64: 16, 1>}]} {
    %c0 = arith.constant 0 : index
    %c0_0 = arith.constant 0 : index
    %0 = vector.load %arg1[%c0, %c0_0] : memref<16x32xf32, #tpu.memory_space<vmem>>, vector<16x32xf32>
    %c0_1 = arith.constant 0 : index
    %c0_2 = arith.constant 0 : index
    %1 = vector.load %arg2[%c0_1, %c0_2] : memref<32x1xf32, #tpu.memory_space<vmem>>, vector<32x1xf32>
    %cst = arith.constant dense<0.000000e+00> : vector<16x1xf32>
    %2 = tpu.matmul %0, %1, %cst {dimension_numbers = #tpu.dot_dimension_numbers<[1], [0], [0], [1], [0, 0, 1, 1], [], []>} : vector<16x32xf32>, vector<32x1xf32>, vector<16x1xf32> -> vector<16x1xf32>
    %c0_3 = arith.constant 0 : index
    %3 = memref.load %arg3[%c0_3] : memref<1xf32, #tpu.memory_space<smem>>
    %4 = vector.broadcast %3 : f32 to vector<16x1xf32>
    %5 = arith.addf %2, %4 : vector<16x1xf32>
    %c0_4 = arith.constant 0 : index
    %c0_5 = arith.constant 0 : index
    %6 = vector.load %arg4[%c0_4, %c0_5] : memref<16x1xf32, #tpu.memory_space<vmem>>, vector<16x1xf32>
    tpu.vector_store %arg4[%c0_4, %c0_5], %5 {strides = array<i32>} : memref<16x1xf32, #tpu.memory_space<vmem>>, vector<16x1xf32>,
    return
  }
  func.func @transform_0(%arg0: i32) -> (i32, i32) {
    %c0_i32 = arith.constant 0 : i32
    %c0_i32_0 = arith.constant 0 : i32
    return %arg0, %c0_i32 : i32, i32
  }
  func.func @transform_1(%arg0: i32) -> (i32, i32) {
    %c0_i32 = arith.constant 0 : i32
    %c0_i32_0 = arith.constant 0 : i32
    %c0_i32_1 = arith.constant 0 : i32
    return %c0_i32, %c0_i32_0 : i32, i32
  }
  func.func @transform_2(%arg0: i32) -> i32 {
    %c0_i32 = arith.constant 0 : i32
    %c0_i32_0 = arith.constant 0 : i32
    return %c0_i32 : i32
  }
  func.func @transform_3(%arg0: i32) -> (i32, i32) {
    %c0_i32 = arith.constant 0 : i32
    %c0_i32_0 = arith.constant 0 : i32
    return %arg0, %c0_i32 : i32, i32
  }
}

</mosaic_0001>

<bundles_post_ra>
// kernel: tpu_custom_call.1
= control target key start
LH: loop header
LB: loop body
LE: loop exit
PB: predicated region body
PF: predicated region fallthrough
CT: control target
= control target key end

     0   :  { %vm23_vm0 = vcmask 261120   ;;  %vm105_vm1 = vcmask 7168   ;;  %s186_s1 = inlined_call_operand.vmem [shape: f32[32,1], index: 1, kind: input, shape index: {}]   ;;  %s187_s0 = inlined_call_operand.vmem [shape: f32[16,32], index: 0, kind: input, shape index: {}]   ;;  %s188_s2 = inlined_call_operand.<no memory space> [shape: f32[1], index: 2, kind: input, shape index: {}]   ;;  %s189_s3 = inlined_call_operand.vmem [shape: f32[16,1], index: 3, kind: output, shape index: {}]  }
   0x1   :  { %v17_v0 = vld [vmem:[%s186_s1] sm:$0xff]  ;;  %v18_v1 = vld [vmem:[%s186_s1 + $0x8] sm:$0xff]  ;;  %v19_v2 = vld [vmem:[%s186_s1 + $0x10] sm:$0xff]  ;;  %v22_v8 = vstv %s188_s2 }
   0x2   :  { %v131_v3 = vpack.c.bf16 %v18_v1, %v17_v0  ;;  %v20_v4 = vld [vmem:[%s186_s1 + $0x18] sm:$0xff]  ;;  %v15_v5 = vld [vmem:[%s187_s0] sm:$0xff]  ;;  %v16_v7 = vld [vmem:[%s187_s0 + $0x8] sm:$0xff] }
   0x3   :  { %v135_v6 = vpack.c.bf16 %v20_v4, %v19_v2  ;;  %128 = vmatprep.mubr.msk.f32.mxu0 %vm23_vm0, %v15_v5 }
   0x4   :  { %132 = vmatprep.subr.bf16.mxu0 %v131_v3 }
   0x5   :  { %134 = vmatpush3.bf16.msra.mxu0 %v131_v3 }
   0x6   :  { %136 = vmatprep.subr.bf16.mxu0 %v135_v6 }
   0x9   :  { %138 = vmatpush3.bf16.msra.mxu0 %v135_v6 }
   0xc   :  { %129 = vmatmul.mubr.msk.f32.vlgmr.msra.gmra.mrb[0].mxu0 %vm23_vm0, %v16_v7 }
  0xdf   :  { %v130_v9 = vpop.f32.mrb[0].mxu0 }
  0xe0   :  { %v102_v10 = vadd.f32 %v130_v9, %v22_v8  ;;  %v96_v11 = vpop.f32.mrb[1].mxu0 }
  0xe1   :  { %v97_v12 = vadd.f32 %v96_v11, %v22_v8 }
  0xe2   :  { %107 = vst.msk [vmem:[%s189_s3 + $0x8] sm:$0xff] %vm105_vm1, %v102_v10 }
  0xe3   :  { %106 = vst.msk [vmem:[%s189_s3] sm:$0xff] %vm105_vm1, %v97_v12 }

</bundles_post_ra>
